<compile_context>
chip_gen: v5e
topology: v5e:2x2
jax: 0.10.0
libtpu: 0.0.40
codegen_flags: <defaults>
</compile_context>

<pallas_src>
import jax
import jax.numpy as jnp
import numpy as np
from jax.experimental import pallas as pl
from jax.experimental.pallas import tpu as pltpu


def _round_up(x, m):
    return (x + m - 1) // m * m


def _pick_tile_n(n_rows, k_pad, d, in_bytes, max_tile_n=None):
    """Choose the row-tile size and VMEM limit from a v7x-safe budget."""
    vmem_budget = 40 * 1024 * 1024                       # v7x: 64 MiB physical
    sub = {4: 8, 2: 16, 1: 32}.get(in_bytes, 8)          # sublane packing
    # Resident: double-buffered codebook + 0.5*||e||^2 + small partial blocks.
    resident = (2 * k_pad * d * 4 + 2 * 8 * k_pad * 4 + 4 * 8 * k_pad * 4)
    # Per input row: x / q / idx blocks (double-buffered; idx block is lane-
    # padded to 128 in VMEM) + ~4 (tile_n, k_pad) f32 in-kernel intermediates.
    per_row = (2 * d * in_bytes + 2 * d * 4 + 2 * 128 * 4 + 4 * k_pad * 4)
    avail = max(vmem_budget - resident, per_row * sub)
    tile = max(sub, min(avail // per_row, 2048))
    tile = (tile // sub) * sub
    if max_tile_n is not None:
        tile = min(tile, max(sub, (max_tile_n // sub) * sub))
    tile = min(tile, _round_up(n_rows, sub))
    vmem_limit = int(min(max(resident + tile * per_row + (4 << 20), 32 << 20),
                         56 << 20))
    return int(tile), vmem_limit


def _make_vq_kernel(n_valid, tile_n, k_pad, needs_mask, num_tiles,
                    distance_in_bf16):
    """Build the VQ kernel with static closure over the tiling parameters."""

    def kernel(x_ref, emb_ref, esq_ref, q_ref, idx_ref, sse_ref, cnt_ref):
        i = pl.program_id(0)

        x = x_ref[...].astype(jnp.float32)               # (tile_n, D)
        e = emb_ref[...]                                 # (k_pad, D), f32

        # argmin_k ||x - e_k||^2 == argmin_k (0.5*||e_k||^2 - x . e_k).
        # esq_ref holds 0.5*||e_k||^2 with +inf on padded codebook rows.
        if distance_in_bf16:
            cross = jax.lax.dot_general(
                x.astype(jnp.bfloat16), e.astype(jnp.bfloat16),
                (((1,), (1,)), ((), ())),
                preferred_element_type=jnp.float32)
        else:
            cross = jax.lax.dot_general(
                x, e, (((1,), (1,)), ((), ())),
                preferred_element_type=jnp.float32)      # (tile_n, k_pad) MXU
        d = esq_ref[...] - cross                         # (tile_n, k_pad)

        # First-occurrence argmin (matches torch.argmin tie-break).
        # TODO(synk): jnp.argmin would fuse these two cross-lane reduces, but
        # arg-reductions do not reliably lower in Mosaic; keep two-pass form.
        col = jax.lax.broadcasted_iota(jnp.int32, d.shape, 1)
        d_min = jnp.min(d, axis=1, keepdims=True)
        idx = jnp.min(jnp.where(d <= d_min, col, k_pad),
                      axis=1, keepdims=True)             # (tile_n, 1) int32
        idx_ref[...] = idx                               # only 4 B/row to HBM

        # One-hot lives in VMEM only; it feeds the quantize matmul + counts.
        enc = (col == idx).astype(jnp.float32)           # (tile_n, k_pad)

        # quantized = one_hot @ embedding  (exact f32 row select on the MXU)
        q = jnp.dot(enc, e, preferred_element_type=jnp.float32)
        q_ref[...] = q

        diff = q - x

        def _store_partials(mask):
            if mask is None:
                sq, cnt = diff * diff, enc
            else:
                sq, cnt = diff * diff * mask, enc * mask
            # Row-only reduces; counts stay exact integers in f32 (< 2^24).
            sse_ref[...] = jnp.sum(sq, axis=0, keepdims=True).reshape(
                sse_ref.shape)
            cnt_ref[...] = jnp.sum(cnt, axis=0, keepdims=True).reshape(
                cnt_ref.shape)

        if needs_mask:
            # Only the last tile contains zero-padded rows: pay the iota /
            # compare / extra multiplies there only.
            @pl.when(i < num_tiles - 1)
            def _plain():
                _store_partials(None)

            @pl.when(i == num_tiles - 1)
            def _masked():
                row = (jax.lax.broadcasted_iota(jnp.int32, (tile_n, 1), 0)
                       + i * tile_n)
                _store_partials((row < n_valid).astype(jnp.float32))
        else:
            _store_partials(None)

    return kernel


def vector_quantizer_forward(x_nchw, embedding, commitment_cost=1.0,
                             distance_in_bf16=False, max_tile_n=None):
    """Forward pass matching VectorQuantizer.forward (value semantics).

    Returns (loss, quantized_nchw, perplexity, encodings).
    """
    B, C, H, W = x_nchw.shape
    K, D = embedding.shape
    assert C == D, "channel dim must equal embedding_dim"

    N = B * H * W
    K_pad = _round_up(K, 128)                     # lane-dense codebook axis
    in_bytes = jnp.dtype(x_nchw.dtype).itemsize
    tile_n, vmem_limit = _pick_tile_n(N, K_pad, D, in_bytes, max_tile_n)
    N_pad = _round_up(N, tile_n)
    needs_mask = (N_pad != N)
    num_tiles = N_pad // tile_n

    # NCHW -> NHWC -> flat (N, D); keep native dtype (no extra f32 copy).
    x_nhwc = jnp.transpose(x_nchw, (0, 2, 3, 1))
    flat = x_nhwc.reshape(N, D)
    if needs_mask:
        flat = jnp.pad(flat, ((0, N_pad - N), (0, 0)))

    # Codebook: pad K -> K_pad; precompute 0.5*||e||^2 with +inf on pad rows
    # so the argmin can never select a padded code.
    emb_f32 = embedding.astype(jnp.float32)
    emb_pad = jnp.pad(emb_f32, ((0, K_pad - K), (0, 0))) if K_pad != K else emb_f32
    e_half_sq = 0.5 * jnp.sum(emb_pad * emb_pad, axis=1)
    e_half_sq = jnp.where(jnp.arange(K_pad) >= K, jnp.float32(jnp.inf),
                          e_half_sq).reshape(1, K_pad).astype(jnp.float32)

    kernel = _make_vq_kernel(N, tile_n, K_pad, needs_mask, num_tiles,
                             distance_in_bf16)

    q_pad, idx_pad, sse_part, cnt_part = pl.pallas_call(
        kernel,
        grid=(num_tiles,),
        out_shape=(
            jax.ShapeDtypeStruct((N_pad, D), jnp.float32),            # quantized
            jax.ShapeDtypeStruct((N_pad, 1), jnp.int32),              # code index
            jax.ShapeDtypeStruct((num_tiles, 1, D), jnp.float32),     # sse partial
            jax.ShapeDtypeStruct((num_tiles, 1, K_pad), jnp.float32), # count part.
        ),
        in_specs=[
            pl.BlockSpec((tile_n, D), lambda i: (i, 0)),     # x rows
            pl.BlockSpec((K_pad, D), lambda i: (0, 0)),      # codebook (resident)
            pl.BlockSpec((1, K_pad), lambda i: (0, 0)),      # 0.5*||e||^2
        ],
        out_specs=(
            pl.BlockSpec((tile_n, D), lambda i: (i, 0)),
            pl.BlockSpec((tile_n, 1), lambda i: (i, 0)),
            pl.BlockSpec((1, 1, D), lambda i: (i, 0, 0)),
            pl.BlockSpec((1, 1, K_pad), lambda i: (i, 0, 0)),
        ),
        compiler_params=pltpu.CompilerParams(
            # Every output block is per-tile (no resident accumulators), so the
            # single grid axis is fully parallel -> both v7x TensorCores used.
            dimension_semantics=("parallel",),
            vmem_limit_bytes=vmem_limit,
        ),
    )(flat, emb_pad, e_half_sq)

    # Tiny finalization stays in XLA.
    idx = idx_pad[:N, 0]
    encodings = jax.nn.one_hot(idx, K, dtype=jnp.float32)   # dense only here
    q = q_pad[:N]
    counts_k = jnp.sum(cnt_part, axis=(0, 1))[:K]
    sse = jnp.sum(sse_part)

    # mse_loss over all elements; q_latent_loss == e_latent_loss in value
    # (the .detach() calls only change gradients).
    mse = sse / jnp.float32(N * D)
    loss = mse + commitment_cost * mse

    # Straight-through estimator: forward value is just `quantized`.
    quantized_nhwc = q.reshape(B, H, W, D)
    quantized_nchw = jnp.transpose(quantized_nhwc, (0, 3, 1, 2))

    avg_probs = counts_k / jnp.float32(N)
    perplexity = jnp.exp(-jnp.sum(avg_probs * jnp.log(avg_probs + 1e-10)))

    return loss, quantized_nchw, perplexity, encodings


def _reference_forward(x_nchw, embedding, commitment_cost):
    """Pure-JAX reference mirroring the PyTorch module (value semantics)."""
    B, C, H, W = x_nchw.shape
    K, D = embedding.shape
    x = jnp.transpose(x_nchw, (0, 2, 3, 1)).reshape(-1, D).astype(jnp.float32)
    e = embedding.astype(jnp.float32)
    d = (jnp.sum(x * x, axis=1, keepdims=True) + jnp.sum(e * e, axis=1)[None]
         - 2.0 * jnp.dot(x, e.T, precision=jax.lax.Precision.HIGHEST))
    idx = jnp.argmin(d, axis=1)
    enc = jax.nn.one_hot(idx, K, dtype=jnp.float32)
    q = e[idx]                     # == one_hot @ e exactly (row select)
    mse = jnp.mean((q - x) ** 2)
    loss = mse + commitment_cost * mse
    quantized = jnp.transpose(q.reshape(B, H, W, D), (0, 3, 1, 2))
    avg_probs = jnp.mean(enc, axis=0)
    perplexity = jnp.exp(-jnp.sum(avg_probs * jnp.log(avg_probs + 1e-10)))
    return loss, quantized, perplexity, enc


def _check(got, want):
    loss, q, ppl, enc = got
    r_loss, r_q, r_ppl, r_enc = want
    np.testing.assert_allclose(np.asarray(loss), np.asarray(r_loss),
                               rtol=1e-5, atol=1e-6)
    np.testing.assert_allclose(np.asarray(q), np.asarray(r_q),
                               rtol=1e-5, atol=2e-6)
    np.testing.assert_allclose(np.asarray(ppl), np.asarray(r_ppl),
                               rtol=1e-4, atol=1e-5)
    np.testing.assert_array_equal(np.asarray(enc), np.asarray(r_enc))


if __name__ == "__main__":
    commitment_cost = 1.0
    embedding_dim = 64
    num_embeddings = 20

    key = jax.random.PRNGKey(0)
    k_emb, k_x, k_x2 = jax.random.split(key, 3)

    # Codebook init ~ uniform(-1/K, 1/K), like nn.Embedding init in the module.
    embedding = jax.random.uniform(
        k_emb, (num_embeddings, embedding_dim), jnp.float32,
        minval=-1.0 / num_embeddings, maxval=1.0 / num_embeddings)

    # Case 1: small NCHW input (C must equal embedding_dim), single tile.
    x = jax.random.normal(k_x, (2, embedding_dim, 8, 8), jnp.float32)
    outs = vector_quantizer_forward(x, embedding, commitment_cost)
    jax.block_until_ready(outs)
    loss, quantized, perplexity, encodings = outs
    assert quantized.shape == x.shape
    assert encodings.shape == (2 * 8 * 8, num_embeddings)
    _check(outs, _reference_forward(x, embedding, commitment_cost))

    # Case 2: non-divisible row count + capped tile -> multi-tile parallel
    # grid with a masked final tile (exercises the padding path).
    x2 = jax.random.normal(k_x2, (2, embedding_dim, 8, 9), jnp.float32)
    outs2 = vector_quantizer_forward(x2, embedding, commitment_cost,
                                     max_tile_n=64)
    jax.block_until_ready(outs2)
    _check(outs2, _reference_forward(x2, embedding, commitment_cost))

    print("KERNEL_OK")
</pallas_src>

<mosaic_0001>
module attributes {stable_mosaic.version = 11 : i64} {
  func.func @kernel(%arg0: i32, %arg1: memref<128x64xf32, #tpu.memory_space<vmem>>, %arg2: memref<128x64xf32, #tpu.memory_space<vmem>>, %arg3: memref<1x128xf32, #tpu.memory_space<vmem>>, %arg4: memref<128x64xf32, #tpu.memory_space<vmem>>, %arg5: memref<128x1xi32, #tpu.memory_space<vmem>>, %arg6: memref<1x1x64xf32, #tpu.memory_space<vmem>>, %arg7: memref<1x1x128xf32, #tpu.memory_space<vmem>>) attributes {dimension_semantics = [#tpu.dimension_semantics<parallel>], iteration_bounds = array<i64: 1>, scalar_prefetch = 0 : i64, scratch_operands = 0 : i64, tpu.core_type = #tpu.core_type<tc>, window_params = [{transform_indices = @transform_0, window_bounds = array<i64: 128, 64>}, {pipeline_mode = #tpu.pipeline_mode<synchronous>, transform_indices = @transform_1, window_bounds = array<i64: 128, 64>}, {pipeline_mode = #tpu.pipeline_mode<synchronous>, transform_indices = @transform_2, window_bounds = array<i64: 1, 128>}, {transform_indices = @transform_3, window_bounds = array<i64: 128, 64>}, {transform_indices = @transform_4, window_bounds = array<i64: 128, 1>}, {transform_indices = @transform_5, window_bounds = array<i64: 1, 1, 64>}, {transform_indices = @transform_6, window_bounds = array<i64: 1, 1, 128>}]} {
    %c0 = arith.constant 0 : index
    %c0_0 = arith.constant 0 : index
    %0 = vector.load %arg1[%c0, %c0_0] : memref<128x64xf32, #tpu.memory_space<vmem>>, vector<128x64xf32>
    %c0_1 = arith.constant 0 : index
    %c0_2 = arith.constant 0 : index
    %1 = vector.load %arg2[%c0_1, %c0_2] : memref<128x64xf32, #tpu.memory_space<vmem>>, vector<128x64xf32>
    %cst = arith.constant dense<0.000000e+00> : vector<128x128xf32>
    %2 = tpu.matmul %0, %1, %cst {dimension_numbers = #tpu.dot_dimension_numbers<[1], [1], [0], [0], [0, 0, 1, 0], [], []>} : vector<128x64xf32>, vector<128x64xf32>, vector<128x128xf32> -> vector<128x128xf32>
    %c0_3 = arith.constant 0 : index
    %c0_4 = arith.constant 0 : index
    %3 = vector.load %arg3[%c0_3, %c0_4] : memref<1x128xf32, #tpu.memory_space<vmem>>, vector<1x128xf32>
    %4 = vector.broadcast %3 : vector<1x128xf32> to vector<128x128xf32>
    %5 = arith.subf %4, %2 : vector<128x128xf32>
    %6 = tpu.iota {dimensions = array<i32: 1>} : vector<128x128xi32>
    %cst_5 = arith.constant dense<0x7F800000> : vector<128xf32>
    %7 = vector.multi_reduction <minimumf>, %5, %cst_5 [1] : vector<128x128xf32> to vector<128xf32>
    %8 = vector.shape_cast %7 : vector<128xf32> to vector<128x1xf32>
    %9 = vector.broadcast %8 : vector<128x1xf32> to vector<128x128xf32>
    %10 = arith.cmpf ole, %5, %9 : vector<128x128xf32>
    %c128_i32 = arith.constant 128 : i32
    %11 = vector.broadcast %c128_i32 : i32 to vector<128x128xi32>
    %12 = arith.select %10, %6, %11 : vector<128x128xi1>, vector<128x128xi32>
    %cst_6 = arith.constant dense<2147483647> : vector<128xi32>
    %13 = vector.multi_reduction <minsi>, %12, %cst_6 [1] : vector<128x128xi32> to vector<128xi32>
    %14 = vector.shape_cast %13 : vector<128xi32> to vector<128x1xi32>
    %c0_7 = arith.constant 0 : index
    %c0_8 = arith.constant 0 : index
    %15 = vector.load %arg5[%c0_7, %c0_8] : memref<128x1xi32, #tpu.memory_space<vmem>>, vector<128x1xi32>
    tpu.vector_store %arg5[%c0_7, %c0_8], %14 {strides = array<i32>} : memref<128x1xi32, #tpu.memory_space<vmem>>, vector<128x1xi32>,
    %16 = vector.broadcast %14 : vector<128x1xi32> to vector<128x128xi32>
    %17 = arith.cmpi eq, %6, %16 : vector<128x128xi32>
    %18 = arith.extui %17 : vector<128x128xi1> to vector<128x128xi32>
    %19 = arith.sitofp %18 : vector<128x128xi32> to vector<128x128xf32>
    %cst_9 = arith.constant dense<0.000000e+00> : vector<128x64xf32>
    %20 = tpu.matmul %19, %1, %cst_9 {dimension_numbers = #tpu.dot_dimension_numbers<[1], [0], [0], [1], [0, 0, 1, 1], [], []>} : vector<128x128xf32>, vector<128x64xf32>, vector<128x64xf32> -> vector<128x64xf32>
    %c0_10 = arith.constant 0 : index
    %c0_11 = arith.constant 0 : index
    %21 = vector.load %arg4[%c0_10, %c0_11] : memref<128x64xf32, #tpu.memory_space<vmem>>, vector<128x64xf32>
    tpu.vector_store %arg4[%c0_10, %c0_11], %20 {strides = array<i32>} : memref<128x64xf32, #tpu.memory_space<vmem>>, vector<128x64xf32>,
    %22 = arith.subf %20, %0 : vector<128x64xf32>
    %23 = arith.mulf %22, %22 : vector<128x64xf32>
    %cst_12 = arith.constant dense<0.000000e+00> : vector<64xf32>
    %24 = vector.multi_reduction <add>, %23, %cst_12 [0] : vector<128x64xf32> to vector<64xf32>
    %25 = vector.shape_cast %24 : vector<64xf32> to vector<1x64xf32>
    %26 = vector.shape_cast %25 : vector<1x64xf32> to vector<1x1x64xf32>
    %c0_13 = arith.constant 0 : index
    %c0_14 = arith.constant 0 : index
    %c0_15 = arith.constant 0 : index
    %27 = vector.load %arg6[%c0_13, %c0_14, %c0_15] : memref<1x1x64xf32, #tpu.memory_space<vmem>>, vector<1x1x64xf32>
    tpu.vector_store %arg6[%c0_13, %c0_14, %c0_15], %26 {strides = array<i32>} : memref<1x1x64xf32, #tpu.memory_space<vmem>>, vector<1x1x64xf32>,
    %cst_16 = arith.constant dense<0.000000e+00> : vector<128xf32>
    %28 = vector.multi_reduction <add>, %19, %cst_16 [0] : vector<128x128xf32> to vector<128xf32>
    %29 = vector.shape_cast %28 : vector<128xf32> to vector<1x128xf32>
    %30 = vector.shape_cast %29 : vector<1x128xf32> to vector<1x1x128xf32>
    %c0_17 = arith.constant 0 : index
    %c0_18 = arith.constant 0 : index
    %c0_19 = arith.constant 0 : index
    %31 = vector.load %arg7[%c0_17, %c0_18, %c0_19] : memref<1x1x128xf32, #tpu.memory_space<vmem>>, vector<1x1x128xf32>
    tpu.vector_store %arg7[%c0_17, %c0_18, %c0_19], %30 {strides = array<i32>} : memref<1x1x128xf32, #tpu.memory_space<vmem>>, vector<1x1x128xf32>,
    return
  }
  func.func @transform_0(%arg0: i32) -> (i32, i32) {
    %c0_i32 = arith.constant 0 : i32
    %c0_i32_0 = arith.constant 0 : i32
    return %arg0, %c0_i32 : i32, i32
  }
  func.func @transform_1(%arg0: i32) -> (i32, i32) {
    %c0_i32 = arith.constant 0 : i32
    %c0_i32_0 = arith.constant 0 : i32
    %c0_i32_1 = arith.constant 0 : i32
    return %c0_i32, %c0_i32_0 : i32, i32
  }
  func.func @transform_2(%arg0: i32) -> (i32, i32) {
    %c0_i32 = arith.constant 0 : i32
    %c0_i32_0 = arith.constant 0 : i32
    %c0_i32_1 = arith.constant 0 : i32
    return %c0_i32, %c0_i32_0 : i32, i32
  }
  func.func @transform_3(%arg0: i32) -> (i32, i32) {
    %c0_i32 = arith.constant 0 : i32
    %c0_i32_0 = arith.constant 0 : i32
    return %arg0, %c0_i32 : i32, i32
  }
  func.func @transform_4(%arg0: i32) -> (i32, i32) {
    %c0_i32 = arith.constant 0 : i32
    %c0_i32_0 = arith.constant 0 : i32
    return %arg0, %c0_i32 : i32, i32
  }
  func.func @transform_5(%arg0: i32) -> (i32, i32, i32) {
    %c0_i32 = arith.constant 0 : i32
    %c0_i32_0 = arith.constant 0 : i32
    %c0_i32_1 = arith.constant 0 : i32
    return %arg0, %c0_i32, %c0_i32_0 : i32, i32, i32
  }
  func.func @transform_6(%arg0: i32) -> (i32, i32, i32) {
    %c0_i32 = arith.constant 0 : i32
    %c0_i32_0 = arith.constant 0 : i32
    %c0_i32_1 = arith.constant 0 : i32
    return %arg0, %c0_i32, %c0_i32_0 : i32, i32, i32
  }
}

</mosaic_0001>

<bundles_post_ra>
// kernel: tpu_custom_call.1
= control target key start
LH: loop header
LB: loop body
LE: loop exit
PB: predicated region body
PF: predicated region fallthrough
CT: control target
= control target key end

     0   :  { %12 = vsyncpa [#allocation3], 0  ;;  %vm52_vm0 = vcmask 523264   ;;  %s1926_s0 = inlined_call_operand.vmem [shape: f32[128,64], index: 0, kind: input, shape index: {}]   ;;  %s1927_s1 = inlined_call_operand.vmem [shape: f32[128,64], index: 1, kind: input, shape index: {}]   ;;  %s1928_s2 = inlined_call_operand.vmem [shape: f32[1,128], index: 2, kind: input, shape index: {}]   ;;  %s1929_s3 = inlined_call_operand.vmem [shape: f32[128,64], index: 3, kind: output, shape index: {0}]   ;;  %s1930_s4 = inlined_call_operand.vmem [shape: s32[128,1], index: 4, kind: output, shape index: {1}]   ;;  %s1931_s5 = inlined_call_operand.hbm [shape: f32[1,1,64], index: 5, kind: output, shape index: {2}]   ;;  %s1932_s6 = inlined_call_operand.hbm [shape: f32[1,1,128], index: 6, kind: output, shape index: {3}]  }
   0x1   :  { %v1034_v0 = vld [vmem:[%s1927_s1 + $0x78] sm:$0xff]  ;;  %v1043_v1 = vld [vmem:[%s1927_s1 + $0x70] sm:$0xff] }
   0x2   :  { %803 = vmatpush.xpose.msk.msra.mxu0 %vm52_vm0, %v1034_v0  ;;  %867 = vmatpush.xpose.msk.msra.mxu2 %vm52_vm0, %v1034_v0 }
   0x3   :  { %868 = vmatpush.xpose.msk.msra.mxu3 %vm52_vm0, %v1034_v0  ;;  %899 = vmatpush.msra.mxu1 %v1034_v0 }
   0x4   :  { %13 = vsyncpa [#allocation5], 0  ;;  %v1056_v2 = vld [vmem:[%s1927_s1 + $0x68] sm:$0xff]  ;;  %v1064_v3 = vld [vmem:[%s1927_s1 + $0x60] sm:$0xff]  ;;  %s785_s21 = sshll.u32 %s1932_s6, 4  ;;  %s995_s8 = smov [#allocation2]   ;;  %s786_s21 = int_to_ptr.hbm [resolvable:$true] %s785_s21 }
   0x5   :  { %901 = vmatpush.msra.mxu1 %v1043_v1  ;;  %v1074_v4 = vld [vmem:[%s1927_s1 + $0x58] sm:$0xff]  ;;  %v1082_v5 = vld [vmem:[%s1927_s1 + $0x50] sm:$0xff]  ;;  %v1092_v6 = vld [vmem:[%s1927_s1 + $0x48] sm:$0xff]  ;;  %s772_s9 = sshll.u32 %s995_s8, 4  ;;  %s774_s11 = sshll.u32 %s1931_s5, 4  ;;  %s773_s9 = int_to_ptr.vmem [resolvable:$true] %s772_s9  ;;  %s775_s11 = int_to_ptr.hbm [resolvable:$true] %s774_s11 }
   0x6   :  { %804 = vmatpush.xpose.msk.msra.mxu0 %vm52_vm0, %v1043_v1  ;;  %869 = vmatpush.xpose.msk.msra.mxu2 %vm52_vm0, %v1043_v1  ;;  %v1100_v7 = vld [vmem:[%s1927_s1 + $0x40] sm:$0xff]  ;;  %v1110_v8 = vld [vmem:[%s1927_s1 + $0x38] sm:$0xff]  ;;  %v1118_v9 = vld [vmem:[%s1927_s1 + $0x30] sm:$0xff] }
   0x7   :  { %870 = vmatpush.xpose.msk.msra.mxu3 %vm52_vm0, %v1043_v1  ;;  %903 = vmatpush.msra.mxu1 %v1056_v2  ;;  %v1128_v10 = vld [vmem:[%s1927_s1 + $0x28] sm:$0xff]  ;;  %v1136_v11 = vld [vmem:[%s1927_s1 + $0x20] sm:$0xff]  ;;  %v1146_v12 = vld [vmem:[%s1927_s1 + $0x18] sm:$0xff] }
   0x8   :  { %v1154_v13 = vld [vmem:[%s1927_s1 + $0x10] sm:$0xff]  ;;  %v1164_v14 = vld [vmem:[%s1927_s1 + $0x8] sm:$0xff]  ;;  %v1172_v15 = vld [vmem:[%s1927_s1] sm:$0xff] }
   0x9   :  { %905 = vmatpush.msra.mxu1 %v1064_v3  ;;  %v1224_v16 = vld [vmem:[%s1926_s0] sm:$0xff]  ;;  %v1229_v17 = vld [vmem:[%s1926_s0 + $0x28] sm:$0xff]  ;;  %v1255_v20 = vld [vmem:[%s1926_s0 + $0x30] sm:$0xff] }
   0xa   :  { %805 = vmatpush.xpose.msk.msra.mxu0 %vm52_vm0, %v1056_v2  ;;  %871 = vmatpush.xpose.msk.msra.mxu2 %vm52_vm0, %v1056_v2  ;;  %v32_v18 = vld [vmem:[%s1926_s0 + $0x60] sm:$0xff]  ;;  %v1250_v19 = vld [vmem:[%s1926_s0 + $0x8] sm:$0xff]  ;;  %v1275_v22 = vld [vmem:[%s1926_s0 + $0x10] sm:$0xff] }
   0xb   :  { %872 = vmatpush.xpose.msk.msra.mxu3 %vm52_vm0, %v1056_v2  ;;  %907 = vmatpush.msra.mxu1 %v1074_v4  ;;  %v33_v21 = vld [vmem:[%s1926_s0 + $0x68] sm:$0xff]  ;;  %v1280_v23 = vld [vmem:[%s1926_s0 + $0x38] sm:$0xff]  ;;  %v34_v24 = vld [vmem:[%s1926_s0 + $0x70] sm:$0xff] }
   0xc   :  { %v1300_v25 = vld [vmem:[%s1926_s0 + $0x18] sm:$0xff]  ;;  %v1305_v26 = vld [vmem:[%s1926_s0 + $0x40] sm:$0xff]  ;;  %v1330_v29 = vld [vmem:[%s1926_s0 + $0x48] sm:$0xff] }
   0xd   :  { %909 = vmatpush.msra.mxu1 %v1082_v5  ;;  %v35_v27 = vld [vmem:[%s1926_s0 + $0x78] sm:$0xff]  ;;  %v1325_v28 = vld [vmem:[%s1926_s0 + $0x20] sm:$0xff]  ;;  %v1343_v30 = vld [vmem:[%s1926_s0 + $0x50] sm:$0xff] }
   0xe   :  { %806 = vmatpush.xpose.msk.msra.mxu0 %vm52_vm0, %v1064_v3  ;;  %873 = vmatpush.xpose.msk.msra.mxu2 %vm52_vm0, %v1064_v3  ;;  %v1351_v31 = vld [vmem:[%s1926_s0 + $0x58] sm:$0xff]  ;;  %v935_v35 = vld [vmem:[%s1928_s2] ss:$0 sm:$0xff] }
   0xf   :  { %874 = vmatpush.xpose.msk.msra.mxu3 %vm52_vm0, %v1064_v3  ;;  %911 = vmatpush.msra.mxu1 %v1092_v6 }
  0x11   :  { %913 = vmatpush.msra.mxu1 %v1100_v7 }
  0x12   :  { %807 = vmatpush.xpose.msk.msra.mxu0 %vm52_vm0, %v1074_v4  ;;  %875 = vmatpush.xpose.msk.msra.mxu2 %vm52_vm0, %v1074_v4 }
  0x13   :  { %876 = vmatpush.xpose.msk.msra.mxu3 %vm52_vm0, %v1074_v4  ;;  %915 = vmatpush.msra.mxu1 %v1110_v8 }
  0x15   :  { %917 = vmatpush.msra.mxu1 %v1118_v9 }
  0x16   :  { %808 = vmatpush.xpose.msk.msra.mxu0 %vm52_vm0, %v1082_v5  ;;  %877 = vmatpush.xpose.msk.msra.mxu2 %vm52_vm0, %v1082_v5 }
  0x17   :  { %878 = vmatpush.xpose.msk.msra.mxu3 %vm52_vm0, %v1082_v5  ;;  %919 = vmatpush.msra.mxu1 %v1128_v10 }
  0x19   :  { %921 = vmatpush.msra.mxu1 %v1136_v11 }
  0x1a   :  { %809 = vmatpush.xpose.msk.msra.mxu0 %vm52_vm0, %v1092_v6  ;;  %879 = vmatpush.xpose.msk.msra.mxu2 %vm52_vm0, %v1092_v6 }
  0x1b   :  { %880 = vmatpush.xpose.msk.msra.mxu3 %vm52_vm0, %v1092_v6  ;;  %923 = vmatpush.msra.mxu1 %v1146_v12 }
  0x1d   :  { %925 = vmatpush.msra.mxu1 %v1154_v13 }
  0x1e   :  { %810 = vmatpush.xpose.msk.msra.mxu0 %vm52_vm0, %v1100_v7  ;;  %881 = vmatpush.xpose.msk.msra.mxu2 %vm52_vm0, %v1100_v7 }
  0x1f   :  { %882 = vmatpush.xpose.msk.msra.mxu3 %vm52_vm0, %v1100_v7  ;;  %927 = vmatpush.msra.mxu1 %v1164_v14 }
  0x21   :  { %929 = vmatpush.msra.mxu1 %v1172_v15 }
  0x22   :  { %811 = vmatpush.xpose.msk.msra.mxu0 %vm52_vm0, %v1110_v8  ;;  %883 = vmatpush.xpose.msk.msra.mxu2 %vm52_vm0, %v1110_v8 }
  0x23   :  { %884 = vmatpush.xpose.msk.msra.mxu3 %vm52_vm0, %v1110_v8 }
  0x26   :  { %812 = vmatpush.xpose.msk.msra.mxu0 %vm52_vm0, %v1118_v9  ;;  %885 = vmatpush.xpose.msk.msra.mxu2 %vm52_vm0, %v1118_v9 }
  0x27   :  { %886 = vmatpush.xpose.msk.msra.mxu3 %vm52_vm0, %v1118_v9 }
  0x2a   :  { %813 = vmatpush.xpose.msk.msra.mxu0 %vm52_vm0, %v1128_v10  ;;  %887 = vmatpush.xpose.msk.msra.mxu2 %vm52_vm0, %v1128_v10 }
  0x2b   :  { %888 = vmatpush.xpose.msk.msra.mxu3 %vm52_vm0, %v1128_v10 }
  0x2e   :  { %814 = vmatpush.xpose.msk.msra.mxu0 %vm52_vm0, %v1136_v11  ;;  %889 = vmatpush.xpose.msk.msra.mxu2 %vm52_vm0, %v1136_v11 }
  0x2f   :  { %890 = vmatpush.xpose.msk.msra.mxu3 %vm52_vm0, %v1136_v11 }
  0x32   :  { %815 = vmatpush.xpose.msk.msra.mxu0 %vm52_vm0, %v1146_v12  ;;  %891 = vmatpush.xpose.msk.msra.mxu2 %vm52_vm0, %v1146_v12 }
  0x33   :  { %892 = vmatpush.xpose.msk.msra.mxu3 %vm52_vm0, %v1146_v12 }
  0x36   :  { %816 = vmatpush.xpose.msk.msra.mxu0 %vm52_vm0, %v1154_v13  ;;  %893 = vmatpush.xpose.msk.msra.mxu2 %vm52_vm0, %v1154_v13 }
  0x37   :  { %894 = vmatpush.xpose.msk.msra.mxu3 %vm52_vm0, %v1154_v13 }
  0x3a   :  { %817 = vmatpush.xpose.msk.msra.mxu0 %vm52_vm0, %v1164_v14  ;;  %895 = vmatpush.xpose.msk.msra.mxu2 %vm52_vm0, %v1164_v14 }
  0x3b   :  { %896 = vmatpush.xpose.msk.msra.mxu3 %vm52_vm0, %v1164_v14 }
  0x3e   :  { %818 = vmatpush.xpose.msk.msra.mxu0 %vm52_vm0, %v1172_v15  ;;  %897 = vmatpush.xpose.msk.msra.mxu2 %vm52_vm0, %v1172_v15 }
  0x3f   :  { %898 = vmatpush.xpose.msk.msra.mxu3 %vm52_vm0, %v1172_v15 }
  0x41   :  { %819 = vmatmul.msk.f32.vlgmr.msra.gmra.mxu0 %vm52_vm0, %v1224_v16  ;;  %824 = vmatmul.msk.f32.vlgmr.msra.gmra.mxu2 %vm52_vm0, %v1229_v17 }
  0x42   :  { %589 = vmatpush.msrb.mxu0 %v1034_v0  ;;  %831 = vmatmul.msk.f32.vlgmr.msra.gmra.mxu3 %vm52_vm0, %v32_v18 }
  0x43   :  { %900 = vmatpush.msrb.mxu3 %v1034_v0 }
  0x44   :  { %590 = vmatpush.msrb.mxu0 %v1043_v1 }
  0x45   :  { %902 = vmatpush.msrb.mxu3 %v1043_v1  ;;  %v234_v1 = vlaneseq }
  0x46   :  { %591 = vmatpush.msrb.mxu0 %v1056_v2 }
  0x47   :  { %904 = vmatpush.msrb.mxu3 %v1056_v2  ;;  %v1388_v2 = vand.u32 127, %v234_v1 }
  0x48   :  { %592 = vmatpush.msrb.mxu0 %v1064_v3 }
  0x49   :  { %906 = vmatpush.msrb.mxu3 %v1064_v3  ;;  %820 = vmatmul.msk.f32.gmra.mxu0 %vm52_vm0, %v1250_v19 }
  0x4a   :  { %593 = vmatpush.msrb.mxu0 %v1074_v4  ;;  %825 = vmatmul.msk.f32.gmra.mxu2 %vm52_vm0, %v1255_v20 }
  0x4b   :  { %832 = vmatmul.msk.f32.gmra.mxu3 %vm52_vm0, %v33_v21 }
  0x4c   :  { %594 = vmatpush.msrb.mxu0 %v1082_v5  ;;  %908 = vmatpush.msrb.mxu3 %v1074_v4 }
  0x4e   :  { %595 = vmatpush.msrb.mxu0 %v1092_v6  ;;  %910 = vmatpush.msrb.mxu3 %v1082_v5 }
  0x50   :  { %596 = vmatpush.msrb.mxu0 %v1100_v7  ;;  %912 = vmatpush.msrb.mxu3 %v1092_v6 }
  0x51   :  { %821 = vmatmul.msk.f32.gmra.mxu0 %vm52_vm0, %v1275_v22 }
  0x52   :  { %597 = vmatpush.msrb.mxu0 %v1110_v8  ;;  %826 = vmatmul.msk.f32.gmra.mxu2 %vm52_vm0, %v1280_v23 }
  0x53   :  { %833 = vmatmul.msk.f32.gmra.mxu3 %vm52_vm0, %v34_v24 }
  0x54   :  { %598 = vmatpush.msrb.mxu0 %v1118_v9  ;;  %914 = vmatpush.msrb.mxu3 %v1100_v7 }
  0x56   :  { %599 = vmatpush.msrb.mxu0 %v1128_v10  ;;  %916 = vmatpush.msrb.mxu3 %v1110_v8 }
  0x58   :  { %600 = vmatpush.msrb.mxu0 %v1136_v11  ;;  %918 = vmatpush.msrb.mxu3 %v1118_v9 }
  0x59   :  { %822 = vmatmul.msk.f32.gmra.mxu0 %vm52_vm0, %v1300_v25 }
  0x5a   :  { %601 = vmatpush.msrb.mxu0 %v1146_v12  ;;  %827 = vmatmul.msk.f32.gmra.mxu2 %vm52_vm0, %v1305_v26 }
  0x5b   :  { %834 = vmatmul.msk.f32.gmra.mxu3 %vm52_vm0, %v35_v27 }
  0x5c   :  { %602 = vmatpush.msrb.mxu0 %v1154_v13  ;;  %920 = vmatpush.msrb.mxu3 %v1128_v10 }
  0x5e   :  { %603 = vmatpush.msrb.mxu0 %v1164_v14  ;;  %922 = vmatpush.msrb.mxu3 %v1136_v11 }
  0x60   :  { %604 = vmatpush.msrb.mxu0 %v1172_v15  ;;  %924 = vmatpush.msrb.mxu3 %v1146_v12 }
  0x61   :  { %823 = vmatmul.msk.f32.gmra.mxu0 %vm52_vm0, %v1325_v28 }
  0x62   :  { %828 = vmatmul.msk.f32.gmra.mxu2 %vm52_vm0, %v1330_v29  ;;  %926 = vmatpush.msrb.mxu3 %v1154_v13 }
  0x64   :  { %928 = vmatpush.msrb.mxu3 %v1164_v14 }
  0x66   :  { %930 = vmatpush.msrb.mxu3 %v1172_v15 }
  0x6a   :  { %829 = vmatmul.msk.f32.gmra.mxu2 %vm52_vm0, %v1343_v30 }
  0x72   :  { %830 = vmatmul.msk.f32.gmra.mxu2 %vm52_vm0, %v1351_v31 }
  0xbe   :  { %v166_v32 = vpop.f32.mrf.mxu0 }
  0xbf   :  { %v1364_v45 = vsub.f32 %v935_v35, %v166_v32 }
  0xc4   :  { %v181_v33 = vpop.f32.mrf.mxu2 }
  0xc5   :  { %v202_v44 = vpop.f32.mrf.mxu3  ;;  %v223_v50 = vsub.f32 %v935_v35, %v181_v33 }
  0xc6   :  { %v169_v34 = vpop.f32.mrf.mxu0  ;;  %v1385_v0 = vsub.f32 %v935_v35, %v202_v44 }
  0xc7   :  { %v1367_v51 = vsub.f32 %v935_v35, %v169_v34 }
  0xcd   :  { %v184_v36 = vpop.f32.mrf.mxu2 }
  0xce   :  { %v1358_v37 = vsub.f32 %v935_v35, %v184_v36  ;;  %v172_v38 = vpop.f32.mrf.mxu0  ;;  %v205_v48 = vpop.f32.mrf.mxu3 }
  0xcf   :  { %v220_v39 = vsub.f32 %v935_v35, %v172_v38  ;;  %v1370_v52 = vsub.f32 %v935_v35, %v205_v48 }
  0xd0   :  { %248 = vmin.xlane.f32.xlu2 %v1358_v37 }
  0xd1   :  { %240 = vmin.xlane.f32.xlu0 %v220_v39 }
  0xd5   :  { %v187_v40 = vpop.f32.mrf.mxu2 }
  0xd6   :  { %v1361_v41 = vsub.f32 %v935_v35, %v187_v40  ;;  %v175_v42 = vpop.f32.mrf.mxu0  ;;  %v208_v54 = vpop.f32.mrf.mxu3 }
  0xd7   :  { %v221_v43 = vsub.f32 %v935_v35, %v175_v42  ;;  %v1373_v56 = vsub.f32 %v935_v35, %v208_v54 }
  0xd8   :  { %250 = vmin.xlane.f32.xlu2 %v1361_v41 }
  0xd9   :  { %242 = vmin.xlane.f32.xlu0 %v221_v43 }
  0xdd   :  { %v190_v49 = vpop.f32.mrf.mxu2 }
  0xde   :  { %v178_v46 = vpop.f32.mrf.mxu0  ;;  %v226_v53 = vsub.f32 %v935_v35, %v190_v49  ;;  %v211_v58 = vpop.f32.mrf.mxu3 }
  0xdf   :  { %v222_v47 = vsub.f32 %v935_v35, %v178_v46  ;;  %v1376_v60 = vsub.f32 %v935_v35, %v211_v58 }
  0xe0   :  { %236 = vmin.xlane.f32.xlu2 %v1364_v45 }
  0xe1   :  { %244 = vmin.xlane.f32.xlu1 %v222_v47 }
  0xe5   :  { %v193_v55 = vpop.f32.mrf.mxu2 }
  0xe6   :  { %v227_v57 = vsub.f32 %v935_v35, %v193_v55 }
  0xe8   :  { %238 = vmin.xlane.f32.xlu2 %v1367_v51 }
  0xe9   :  { %246 = vmin.xlane.f32.xlu1 %v223_v50 }
  0xed   :  { %v196_v59 = vpop.f32.mrf.mxu2 }
  0xee   :  { %v1378_v61 = vsub.f32 %v935_v35, %v196_v59 }
  0xf0   :  { %262 = vmin.xlane.f32.xlu2 %v1370_v52 }
  0xf1   :  { %252 = vmin.xlane.f32.xlu1 %v226_v53 }
  0xf5   :  { %v199_v62 = vpop.f32.mrf.mxu2 }
  0xf6   :  { %v1382_v63 = vsub.f32 %v935_v35, %v199_v62 }
  0xf8   :  { %264 = vmin.xlane.f32.xlu2 %v1373_v56 }
  0xf9   :  { %254 = vmin.xlane.f32.xlu1 %v227_v57 }
 0x100   :  { %266 = vmin.xlane.f32.xlu2 %v1376_v60 }
 0x101   :  { %256 = vmin.xlane.f32.xlu1 %v1378_v61 }
 0x109   :  { %258 = vmin.xlane.f32.xlu1 %v1382_v63 }
 0x111   :  { %260 = vmin.xlane.f32.xlu1 %v1385_v0 }
 0x143   :  { %v249_v10 = vpop.xlane.xlu2 %248 }
 0x144   :  { %v241_v3 = vpop.xlane.xlu0 %240  ;;  %vm274_vm5 = vcmp.le.f32.partialorder %v1358_v37, %v249_v10 }
 0x145   :  { %vm270_vm1 = vcmp.le.f32.partialorder %v220_v39, %v241_v3  ;;  %v1419_v33 = vsel %vm274_vm5, %v1388_v2, 128 }
 0x146   :  { %v1391_v4 = vsel %vm270_vm1, %v1388_v2, 128  ;;  %v385_v36 = vshra.s32 %v1419_v33, 16 }
 0x147   :  { %v329_v5 = vshra.s32 %v1391_v4, 16 }
 0x148   :  { %v1428_v39 = vcvt.s32.f32 %v385_v36 }
 0x149   :  { %v1394_v6 = vcvt.s32.f32 %v329_v5 }
 0x14b   :  { %332 = vmin.xlane.f32.xlu0 %v1394_v6  ;;  %v251_v18 = vpop.xlane.xlu2 %250 }
 0x14c   :  { %v243_v7 = vpop.xlane.xlu0 %242  ;;  %vm275_vm7 = vcmp.le.f32.partialorder %v1361_v41, %v251_v18 }
 0x14d   :  { %vm271_vm2 = vcmp.le.f32.partialorder %v221_v43, %v243_v7  ;;  %v1433_v42 = vsel %vm275_vm7, %v1388_v2, 128 }
 0x14e   :  { %v1398_v8 = vsel %vm271_vm2, %v1388_v2, 128  ;;  %v399_v44 = vshra.s32 %v1433_v42, 16 }
 0x14f   :  { %v343_v9 = vshra.s32 %v1398_v8, 16 }
 0x150   :  { %v1443_v48 = vcvt.s32.f32 %v399_v44 }
 0x151   :  { %v1401_v11 = vcvt.s32.f32 %v343_v9 }
 0x153   :  { %346 = vmin.xlane.f32.xlu0 %v1401_v11  ;;  %v237_v34 = vpop.xlane.xlu2 %236 }
 0x154   :  { %v245_v12 = vpop.xlane.xlu1 %244  ;;  %vm268_vm9 = vcmp.le.f32.partialorder %v1364_v45, %v237_v34 }
 0x155   :  { %vm272_vm3 = vcmp.le.f32.partialorder %v222_v47, %v245_v12 }
 0x156   :  { %v1405_v13 = vsel %vm272_vm3, %v1388_v2, 128 }
 0x157   :  { %v357_v14 = vshra.s32 %v1405_v13, 16 }
 0x159   :  { %v1408_v15 = vcvt.s32.f32 %v357_v14 }
 0x15b   :  { %360 = vmin.xlane.f32.xlu0 %v1408_v15  ;;  %v239_v46 = vpop.xlane.xlu2 %238 }
 0x15c   :  { %v247_v21 = vpop.xlane.xlu1 %246  ;;  %vm269_vm11 = vcmp.le.f32.partialorder %v1367_v51, %v239_v46 }
 0x15d   :  { %vm273_vm4 = vcmp.le.f32.partialorder %v223_v50, %v247_v21  ;;  %v1448_v50 = vsel %vm268_vm9, %v1388_v2, 128  ;;  %v1464_v62 = vsel %vm269_vm11, %v1388_v2, 128 }
 0x15e   :  { %v1412_v24 = vsel %vm273_vm4, %v1388_v2, 128  ;;  %v301_v54 = vshra.s32 %v1448_v50, 16  ;;  %v315_v1 = vshra.s32 %v1464_v62, 16 }
 0x15f   :  { %v371_v27 = vshra.s32 %v1412_v24, 16 }
 0x160   :  { %v1459_v58 = vcvt.s32.f32 %v301_v54  ;;  %v1475_v5 = vcvt.s32.f32 %v315_v1 }
 0x161   :  { %v1416_v32 = vcvt.s32.f32 %v371_v27 }
 0x163   :  { %374 = vmin.xlane.f32.xlu0 %v1416_v32 }
 0x164   :  { %v253_v35 = vpop.xlane.xlu1 %252 }
 0x165   :  { %vm276_vm6 = vcmp.le.f32.partialorder %v226_v53, %v253_v35 }
 0x166   :  { %v1424_v38 = vsel %vm276_vm6, %v1388_v2, 128 }
 0x167   :  { %v413_v37 = vshra.s32 %v1424_v38, 16 }
 0x169   :  { %v1430_v40 = vcvt.s32.f32 %v413_v37 }
 0x16b   :  { %388 = vmin.xlane.f32.xlu0 %v1428_v39  ;;  %416 = vmin.xlane.f32.xlu2 %v1430_v40 }
 0x16c   :  { %v255_v43 = vpop.xlane.xlu1 %254 }
 0x16d   :  { %vm277_vm8 = vcmp.le.f32.partialorder %v227_v57, %v255_v43  ;;  %v263_v57 = vpop.xlane.xlu2 %262  ;;  %v328_v43 = vand.u32 65535, %v1391_v4  ;;  %v356_v4 = vand.u32 65535, %v1405_v13  ;;  %v384_v13 = vand.u32 65535, %v1419_v33 }
 0x16e   :  { %v1439_v41 = vsel %vm277_vm8, %v1388_v2, 128  ;;  %vm281_vm13 = vcmp.le.f32.partialorder %v1370_v52, %v263_v57  ;;  %v398_v33 = vand.u32 65535, %v1433_v42 }
 0x16f   :  { %v427_v47 = vshra.s32 %v1439_v41, 16  ;;  %v1480_v9 = vsel %vm281_vm13, %v1388_v2, 128  ;;  %v330_v46 = vcvt.s32.f32 %v328_v43 }
 0x170   :  { %v483_v12 = vshra.s32 %v1480_v9, 16 }
 0x171   :  { %v1445_v49 = vcvt.s32.f32 %v427_v47  ;;  %v342_v47 = vand.u32 65535, %v1398_v8  ;;  %v370_v8 = vand.u32 65535, %v1412_v24 }
 0x172   :  { %v1491_v18 = vcvt.s32.f32 %v483_v12 }
 0x173   :  { %402 = vmin.xlane.f32.xlu0 %v1443_v48  ;;  %430 = vmin.xlane.f32.xlu2 %v1445_v49  ;;  %v344_v54 = vcvt.s32.f32 %v342_v47 }
 0x174   :  { %v257_v53 = vpop.xlane.xlu1 %256 }
 0x175   :  { %vm278_vm10 = vcmp.le.f32.partialorder %v1378_v61, %v257_v53  ;;  %v265_v10 = vpop.xlane.xlu2 %264 }
 0x176   :  { %v1455_v45 = vsel %vm278_vm10, %v1388_v2, 128  ;;  %vm282_vm15 = vcmp.le.f32.partialorder %v1373_v56, %v265_v10  ;;  %v412_v10 = vand.u32 65535, %v1424_v38 }
 0x177   :  { %v441_v55 = vshra.s32 %v1455_v45, 16  ;;  %v1496_v27 = vsel %vm282_vm15, %v1388_v2, 128 }
 0x178   :  { %v497_v34 = vshra.s32 %v1496_v27, 16 }
 0x179   :  { %v1461_v59 = vcvt.s32.f32 %v441_v55 }
 0x17a   :  { %v1502_v35 = vcvt.s32.f32 %v497_v34  ;;  %v400_v34 = vcvt.s32.f32 %v398_v33 }
 0x17b   :  { %304 = vmin.xlane.f32.xlu0 %v1459_v58  ;;  %444 = vmin.xlane.f32.xlu2 %v1461_v59 }
 0x17c   :  { %v259_v61 = vpop.xlane.xlu1 %258 }
 0x17d   :  { %vm279_vm12 = vcmp.le.f32.partialorder %v1382_v63, %v259_v61  ;;  %v358_v61 = vcvt.s32.f32 %v356_v4 }
 0x17e   :  { %v1471_v51 = vsel %vm279_vm12, %v1388_v2, 128 }
 0x17f   :  { %v455_v3 = vshra.s32 %v1471_v51, 16 }
 0x181   :  { %v1477_v7 = vcvt.s32.f32 %v455_v3  ;;  %v372_v3 = vcvt.s32.f32 %v370_v8 }
 0x183   :  { %318 = vmin.xlane.f32.xlu0 %v1475_v5  ;;  %458 = vmin.xlane.f32.xlu2 %v1477_v7 }
 0x184   :  { %v261_v63 = vpop.xlane.xlu1 %260 }
 0x185   :  { %vm280_vm14 = vcmp.le.f32.partialorder %v1385_v0, %v261_v63  ;;  %v267_v0 = vpop.xlane.xlu2 %266 }
 0x186   :  { %v1487_v52 = vsel %vm280_vm14, %v1388_v2, 128  ;;  %vm283_vm1 = vcmp.le.f32.partialorder %v1376_v60, %v267_v0 }
 0x187   :  { %v469_v14 = vshra.s32 %v1487_v52, 16  ;;  %v1505_v56 = vsel %vm283_vm1, %v1388_v2, 128 }
 0x188   :  { %v511_v36 = vshra.s32 %v1505_v56, 16 }
 0x189   :  { %v1493_v21 = vcvt.s32.f32 %v469_v14  ;;  %v414_v14 = vcvt.s32.f32 %v412_v10 }
 0x18a   :  { %v1509_v37 = vcvt.s32.f32 %v511_v36 }
 0x18b   :  { %486 = vmin.xlane.f32.xlu0 %v1491_v18  ;;  %472 = vmin.xlane.f32.xlu2 %v1493_v21 }
 0x193   :  { %500 = vmin.xlane.f32.xlu0 %v1502_v35 }
 0x19b   :  { %514 = vmin.xlane.f32.xlu0 %v1509_v37 }
 0x1be   :  { %v1513_v44 = vpop.xlane.xlu0 %332 }
 0x1bf   :  { %vm334_vm2 = vcmp.eq.f32.partialorder %v1394_v6, %v1513_v44 }
 0x1c0   :  { %v335_v60 = vsel %vm334_vm2, %v330_v46, inf }
 0x1c1   :  { %336 = vmin.xlane.f32.xlu1 %v335_v60 }
 0x1c6   :  { %v1518_v53 = vpop.xlane.xlu0 %346 }
 0x1c7   :  { %vm348_vm3 = vcmp.eq.f32.partialorder %v1401_v11, %v1518_v53 }
 0x1c8   :  { %v349_v55 = vsel %vm348_vm3, %v344_v54, inf  ;;  %vm524_vm3 = vcmask 7168  }
 0x1c9   :  { %350 = vmin.xlane.f32.xlu1 %v349_v55 }
 0x1ce   :  { %v1523_v57 = vpop.xlane.xlu0 %360 }
 0x1cf   :  { %vm362_vm4 = vcmp.eq.f32.partialorder %v1408_v15, %v1523_v57  ;;  %v386_v15 = vcvt.s32.f32 %v384_v13 }
 0x1d0   :  { %v363_v6 = vsel %vm362_vm4, %v358_v61, inf }
 0x1d1   :  { %364 = vmin.xlane.f32.xlu1 %v363_v6 }
 0x1d6   :  { %v1528_v1 = vpop.xlane.xlu0 %374 }
 0x1d7   :  { %vm376_vm5 = vcmp.eq.f32.partialorder %v1416_v32, %v1528_v1 }
 0x1d8   :  { %v377_v11 = vsel %vm376_vm5, %v372_v3, inf }
 0x1d9   :  { %378 = vmin.xlane.f32.xlu1 %v377_v11  ;;  %v496_v11 = vand.u32 65535, %v1496_v27  ;;  %v510_v27 = vand.u32 65535, %v1505_v56  ;;  %v992_v56 = vmov 1.0  }
 0x1de   :  { %v1534_v63 = vpop.xlane.xlu0 %388  ;;  %v1536_v12 = vpop.xlane.xlu2 %416 }
 0x1df   :  { %vm390_vm6 = vcmp.eq.f32.partialorder %v1428_v39, %v1534_v63  ;;  %vm418_vm7 = vcmp.eq.f32.partialorder %v1430_v40, %v1536_v12  ;;  %v300_v39 = vand.u32 65535, %v1448_v50  ;;  %v426_v40 = vand.u32 65535, %v1439_v41 }
 0x1e0   :  { %v391_v24 = vsel %vm390_vm6, %v386_v15, inf  ;;  %v419_v32 = vsel %vm418_vm7, %v414_v14, inf  ;;  %v314_v50 = vand.u32 65535, %v1464_v62  ;;  %v440_v41 = vand.u32 65535, %v1455_v45 }
 0x1e1   :  { %392 = vmin.xlane.f32.xlu1 %v391_v24  ;;  %420 = vmin.xlane.f32.xlu2 %v419_v32  ;;  %v302_v46 = vcvt.s32.f32 %v300_v39  ;;  %v428_v60 = vcvt.s32.f32 %v426_v40  ;;  %v482_v62 = vand.u32 65535, %v1480_v9  ;;  %v454_v45 = vand.u32 65535, %v1471_v51 }
 0x1e2   :  { %v442_v54 = vcvt.s32.f32 %v440_v41  ;;  %v316_v55 = vcvt.s32.f32 %v314_v50  ;;  %v468_v9 = vand.u32 65535, %v1487_v52  ;;  %v512_v52 = vcvt.s32.f32 %v510_v27 }
 0x1e3   :  { %v484_v6 = vcvt.s32.f32 %v482_v62  ;;  %v456_v8 = vcvt.s32.f32 %v454_v45  ;;  %v339_v24 = vcvt.f32.s32 %v1513_v44 }
 0x1e4   :  { %v470_v10 = vcvt.s32.f32 %v468_v9 }
 0x1e5   :  { %v340_v33 = vshll.u32 %v339_v24, 16 }
 0x1e6   :  { %v1543_v0 = vpop.xlane.xlu0 %402  ;;  %v1545_v38 = vpop.xlane.xlu2 %430 }
 0x1e7   :  { %vm404_vm8 = vcmp.eq.f32.partialorder %v1443_v48, %v1543_v0  ;;  %vm432_vm9 = vcmp.eq.f32.partialorder %v1445_v49, %v1545_v38 }
 0x1e8   :  { %v405_v36 = vsel %vm404_vm8, %v400_v34, inf  ;;  %v433_v48 = vsel %vm432_vm9, %v428_v60, inf }
 0x1e9   :  { %406 = vmin.xlane.f32.xlu1 %v405_v36  ;;  %v353_v36 = vcvt.f32.s32 %v1518_v53  ;;  %v367_v53 = vcvt.f32.s32 %v1523_v57  ;;  %v381_v57 = vcvt.f32.s32 %v1528_v1  ;;  %v395_v1 = vcvt.f32.s32 %v1534_v63 }
 0x1eb   :  { %v354_v44 = vshll.u32 %v353_v36, 16  ;;  %v368_v60 = vshll.u32 %v367_v53, 16  ;;  %v382_v41 = vshll.u32 %v381_v57, 16  ;;  %v396_v45 = vshll.u32 %v395_v1, 16 }
 0x1ec   :  { %v993_v57 = vmov 0.0  }
 0x1ee   :  { %v1553_v43 = vpop.xlane.xlu0 %304  ;;  %v1555_v42 = vpop.xlane.xlu2 %444 }
 0x1ef   :  { %vm306_vm10 = vcmp.eq.f32.partialorder %v1459_v58, %v1553_v43  ;;  %vm446_vm11 = vcmp.eq.f32.partialorder %v1461_v59, %v1555_v42 }
 0x1f0   :  { %v307_v47 = vsel %vm306_vm10, %v302_v46, inf  ;;  %v447_v58 = vsel %vm446_vm11, %v442_v54, inf }
 0x1f1   :  { %308 = vmin.xlane.f32.xlu0 %v307_v47  ;;  %434 = vmin.xlane.f32.xlu1 %v433_v48 }
 0x1f6   :  { %v1563_v49 = vpop.xlane.xlu0 %318  ;;  %v1567_v4 = vpop.xlane.xlu2 %458 }
 0x1f7   :  { %vm320_vm12 = vcmp.eq.f32.partialorder %v1475_v5, %v1563_v49  ;;  %vm460_vm13 = vcmp.eq.f32.partialorder %v1477_v7, %v1567_v4  ;;  %v498_v7 = vcvt.s32.f32 %v496_v11 }
 0x1f8   :  { %v321_v61 = vsel %vm320_vm12, %v316_v55, inf  ;;  %v461_v3 = vsel %vm460_vm13, %v456_v8, inf }
 0x1f9   :  { %448 = vmin.xlane.f32.xlu0 %v447_v58  ;;  %322 = vmin.xlane.f32.xlu2 %v321_v61  ;;  %v423_v58 = vcvt.f32.s32 %v1536_v12 }
 0x1fb   :  { %v424_v63 = vshll.u32 %v423_v58, 16 }
 0x1fe   :  { %v1573_v59 = vpop.xlane.xlu0 %486  ;;  %v1579_v13 = vpop.xlane.xlu2 %472 }
 0x1ff   :  { %vm488_vm14 = vcmp.eq.f32.partialorder %v1491_v18, %v1573_v59  ;;  %vm474_vm15 = vcmp.eq.f32.partialorder %v1493_v21, %v1579_v13 }
 0x200   :  { %v489_v5 = vsel %vm488_vm14, %v484_v6, inf  ;;  %v475_v15 = vsel %vm474_vm15, %v470_v10, inf  ;;  %v437_v10 = vcvt.f32.s32 %v1545_v38 }
 0x201   :  { %490 = vmin.xlane.f32.xlu1 %v489_v5  ;;  %462 = vmin.xlane.f32.xlu2 %v461_v3  ;;  %v409_v3 = vcvt.f32.s32 %v1543_v0 }
 0x203   :  { %v410_v11 = vshll.u32 %v409_v3, 16 }
 0x206   :  { %v1583_v51 = vpop.xlane.xlu0 %500 }
 0x207   :  { %vm502_vm1 = vcmp.eq.f32.partialorder %v1502_v35, %v1583_v51 }
 0x208   :  { %v503_v18 = vsel %vm502_vm1, %v498_v7, inf }
 0x209   :  { %504 = vmin.xlane.f32.xlu0 %v503_v18  ;;  %476 = vmin.xlane.f32.xlu1 %v475_v15  ;;  %v311_v18 = vcvt.f32.s32 %v1553_v43 }
 0x20b   :  { %v312_v38 = vshll.u32 %v311_v18, 16 }
 0x20e   :  { %v1588_v14 = vpop.xlane.xlu0 %514 }
 0x20f   :  { %vm516_vm2 = vcmp.eq.f32.partialorder %v1509_v37, %v1588_v14 }
 0x210   :  { %v517_v21 = vsel %vm516_vm2, %v512_v52, inf  ;;  %v438_v52 = vshll.u32 %v437_v10, 16 }
 0x211   :  { %518 = vmin.xlane.f32.xlu2 %v517_v21 }
 0x234   :  { %v337_v32 = vpop.xlane.xlu1 %336 }
 0x235   :  { %v338_v34 = vcvt.f32.s32 %v337_v32 }
 0x237   :  { %v1593_v35 = vadd.s32 %v340_v33, %v338_v34  ;;  %v451_v33 = vcvt.f32.s32 %v1555_v42  ;;  %v325_v34 = vcvt.f32.s32 %v1563_v49 }
 0x239   :  { %527 = vst.msk [vmem:[%s1930_s4 + $0x10] sm:$0xff] %vm524_vm3, %v1593_v35  ;;  %vm543_vm4 = vcmp.eq.s32.totalorder %v1388_v2, %v1593_v35  ;;  %v452_v36 = vshll.u32 %v451_v33, 16 }
 0x23a   :  { %853 = vmatmul.msk.f32.vlgmr.msra.gmra.mxu1 %vm543_vm4, %v992_v56 }
 0x23c   :  { %v351_v37 = vpop.xlane.xlu1 %350 }
 0x23d   :  { %v352_v39 = vcvt.f32.s32 %v351_v37  ;;  %v326_v37 = vshll.u32 %v325_v34, 16  ;;  %v521_v34 = vcvt.f32.s32 %v1588_v14 }
 0x23f   :  { %v1607_v40 = vadd.s32 %v354_v44, %v352_v39 }
 0x241   :  { %528 = vst.msk [vmem:[%s1930_s4 + $0x18] sm:$0xff] %vm524_vm3, %v1607_v40  ;;  %vm544_vm5 = vcmp.eq.s32.totalorder %v1388_v2, %v1607_v40 }
 0x242   :  { %854 = vmatmul.msk.f32.gmra.mxu1 %vm544_vm5, %v992_v56 }
 0x244   :  { %v365_v46 = vpop.xlane.xlu1 %364 }
 0x245   :  { %v366_v47 = vcvt.f32.s32 %v365_v46 }
 0x247   :  { %v1621_v48 = vadd.s32 %v368_v60, %v366_v47  ;;  %v465_v60 = vcvt.f32.s32 %v1567_v4  ;;  %v493_v47 = vcvt.f32.s32 %v1573_v59 }
 0x249   :  { %529 = vst.msk [vmem:[%s1930_s4 + $0x20] sm:$0xff] %vm524_vm3, %v1621_v48  ;;  %vm545_vm6 = vcmp.eq.s32.totalorder %v1388_v2, %v1621_v48 }
 0x24a   :  { %855 = vmatmul.msk.f32.gmra.mxu1 %vm545_vm6, %v992_v56  ;;  %v839_v35 = vsel %vm545_vm6, 1.0, %v993_v57 }
 0x24c   :  { %v379_v50 = vpop.xlane.xlu1 %378 }
 0x24d   :  { %v380_v54 = vcvt.f32.s32 %v379_v50 }
 0x24f   :  { %v1635_v55 = vadd.s32 %v382_v41, %v380_v54  ;;  %v466_v41 = vshll.u32 %v465_v60, 16  ;;  %v837_v54 = vsel %vm543_vm4, 1.0, %v993_v57 }
 0x251   :  { %530 = vst.msk [vmem:[%s1930_s4 + $0x28] sm:$0xff] %vm524_vm3, %v1635_v55  ;;  %vm546_vm7 = vcmp.eq.s32.totalorder %v1388_v2, %v1635_v55 }
 0x252   :  { %856 = vmatmul.msk.f32.gmra.mxu1 %vm546_vm7, %v992_v56 }
 0x254   :  { %v421_v61 = vpop.xlane.xlu2 %420  ;;  %v393_v62 = vpop.xlane.xlu1 %392 }
 0x255   :  { %v422_v6 = vcvt.f32.s32 %v421_v61  ;;  %v394_v12 = vcvt.f32.s32 %v393_v62  ;;  %v494_v61 = vshll.u32 %v493_v47, 16 }
 0x257   :  { %v1650_v8 = vadd.s32 %v424_v63, %v422_v6  ;;  %v1652_v5 = vadd.s32 %v396_v45, %v394_v12  ;;  %v838_v6 = vsel %vm544_vm5, 1.0, %v993_v57 }
 0x259   :  { %533 = vst.msk [vmem:[%s1930_s4 + $0x40] sm:$0xff] %vm524_vm3, %v1650_v8  ;;  %vm547_vm8 = vcmp.eq.s32.totalorder %v1388_v2, %v1652_v5  ;;  %vm549_vm11 = vcmp.eq.s32.totalorder %v1388_v2, %v1650_v8 }
 0x25a   :  { %531 = vst.msk [vmem:[%s1930_s4 + $0x30] sm:$0xff] %vm524_vm3, %v1652_v5  ;;  %857 = vmatmul.msk.f32.gmra.mxu1 %vm547_vm8, %v992_v56  ;;  %v841_v48 = vsel %vm547_vm8, 1.0, %v993_v57  ;;  %v843_v5 = vsel %vm549_vm11, 1.0, %v993_v57 }
 0x25c   :  { %v407_v0 = vpop.xlane.xlu1 %406 }
 0x25d   :  { %v408_v9 = vcvt.f32.s32 %v407_v0 }
 0x25f   :  { %v1671_v7 = vadd.s32 %v410_v11, %v408_v9  ;;  %v479_v11 = vcvt.f32.s32 %v1579_v13  ;;  %v507_v9 = vcvt.f32.s32 %v1583_v51  ;;  %v840_v13 = vsel %vm546_vm7, 1.0, %v993_v57 }
 0x261   :  { %532 = vst.msk [vmem:[%s1930_s4 + $0x38] sm:$0xff] %vm524_vm3, %v1671_v7  ;;  %vm548_vm9 = vcmp.eq.s32.totalorder %v1388_v2, %v1671_v7  ;;  %v480_v40 = vshll.u32 %v479_v11, 16 }
 0x262   :  { %858 = vmatmul.msk.f32.gmra.mxu1 %vm548_vm9, %v992_v56 }
 0x264   :  { %v309_v15 = vpop.xlane.xlu0 %308  ;;  %v435_v27 = vpop.xlane.xlu1 %434 }
 0x265   :  { %v310_v21 = vcvt.f32.s32 %v309_v15  ;;  %v436_v43 = vcvt.f32.s32 %v435_v27  ;;  %v508_v15 = vshll.u32 %v507_v9, 16 }
 0x267   :  { %v313_v24 = vadd.s32 %v312_v38, %v310_v21  ;;  %v1686_v32 = vadd.s32 %v438_v52, %v436_v43  ;;  %v842_v21 = vsel %vm548_vm9, 1.0, %v993_v57 }
 0x269   :  { %525 = vst.msk [vmem:[%s1930_s4] sm:$0xff] %vm524_vm3, %v313_v24  ;;  %vm541_vm10 = vcmp.eq.s32.totalorder %v1388_v2, %v313_v24  ;;  %vm550_vm13 = vcmp.eq.s32.totalorder %v1388_v2, %v1686_v32 }
 0x26a   :  { %534 = vst.msk [vmem:[%s1930_s4 + $0x48] sm:$0xff] %vm524_vm3, %v1686_v32  ;;  %851 = vmatmul.msk.f32.vlgmr.msrb.gmra.mxu0 %vm541_vm10, %v992_v56  ;;  %859 = vmatmul.msk.f32.gmra.mxu1 %vm549_vm11, %v992_v56  ;;  %v835_v50 = vsel %vm541_vm10, 1.0, %v993_v57  ;;  %v844_v7 = vsel %vm550_vm13, 1.0, %v993_v57 }
 0x26c   :  { %v449_v42 = vpop.xlane.xlu0 %448  ;;  %v323_v49 = vpop.xlane.xlu2 %322 }
 0x26d   :  { %v450_v44 = vcvt.f32.s32 %v449_v42  ;;  %v324_v39 = vcvt.f32.s32 %v323_v49 }
 0x26f   :  { %v453_v53 = vadd.s32 %v452_v36, %v450_v44  ;;  %v327_v46 = vadd.s32 %v326_v37, %v324_v39  ;;  %v522_v36 = vshll.u32 %v521_v34, 16 }
 0x271   :  { %535 = vst.msk [vmem:[%s1930_s4 + $0x50] sm:$0xff] %vm524_vm3, %v453_v53  ;;  %vm542_vm12 = vcmp.eq.s32.totalorder %v1388_v2, %v327_v46  ;;  %vm551_vm14 = vcmp.eq.s32.totalorder %v1388_v2, %v453_v53 }
 0x272   :  { %526 = vst.msk [vmem:[%s1930_s4 + $0x8] sm:$0xff] %vm524_vm3, %v327_v46  ;;  %v836_v4 = vsel %vm542_vm12, 1.0, %v993_v57  ;;  %852 = vmatmul.msk.f32.gmra.mxu0 %vm542_vm12, %v992_v56  ;;  %860 = vmatmul.msk.f32.gmra.mxu1 %vm550_vm13, %v992_v56  ;;  %v845_v8 = vsel %vm551_vm14, 1.0, %v993_v57 }
 0x273   :  { %v741_v59 = vadd.f32 %v836_v4, %v835_v50 }
 0x274   :  { %v463_v1 = vpop.xlane.xlu2 %462  ;;  %v491_v58 = vpop.xlane.xlu1 %490 }
 0x275   :  { %v742_v62 = vadd.f32 %v837_v54, %v741_v59  ;;  %v464_v45 = vcvt.f32.s32 %v463_v1  ;;  %v492_v63 = vcvt.f32.s32 %v491_v58 }
 0x277   :  { %v743_v12 = vadd.f32 %v838_v6, %v742_v62  ;;  %v467_v3 = vadd.s32 %v466_v41, %v464_v45  ;;  %v495_v0 = vadd.s32 %v494_v61, %v492_v63 }
 0x279   :  { %v744_v10 = vadd.f32 %v839_v35, %v743_v12  ;;  %536 = vst.msk [vmem:[%s1930_s4 + $0x58] sm:$0xff] %vm524_vm3, %v467_v3  ;;  %vm554_vm15 = vcmp.eq.s32.totalorder %v1388_v2, %v495_v0  ;;  %vm552_vm1 = vcmp.eq.s32.totalorder %v1388_v2, %v467_v3 }
 0x27a   :  { %538 = vst.msk [vmem:[%s1930_s4 + $0x68] sm:$0xff] %vm524_vm3, %v495_v0  ;;  %861 = vmatmul.msk.f32.gmra.mxu1 %vm551_vm14, %v992_v56  ;;  %864 = vmatmul.msk.f32.vlgmr.msrb.gmra.mxu3 %vm554_vm15, %v992_v56  ;;  %v846_v44 = vsel %vm552_vm1, 1.0, %v993_v57  ;;  %v848_v53 = vsel %vm554_vm15, 1.0, %v993_v57 }
 0x27b   :  { %v745_v51 = vadd.f32 %v840_v13, %v744_v10 }
 0x27c   :  { %v505_v55 = vpop.xlane.xlu0 %504  ;;  %v477_v18 = vpop.xlane.xlu1 %476 }
 0x27d   :  { %v746_v27 = vadd.f32 %v841_v48, %v745_v51  ;;  %v506_v52 = vcvt.f32.s32 %v505_v55  ;;  %v478_v38 = vcvt.f32.s32 %v477_v18 }
 0x27f   :  { %v747_v43 = vadd.f32 %v842_v21, %v746_v27  ;;  %v509_v24 = vadd.s32 %v508_v15, %v506_v52  ;;  %v481_v33 = vadd.s32 %v480_v40, %v478_v38 }
 0x281   :  { %v748_v42 = vadd.f32 %v843_v5, %v747_v43  ;;  %539 = vst.msk [vmem:[%s1930_s4 + $0x70] sm:$0xff] %vm524_vm3, %v509_v24  ;;  %vm555_vm2 = vcmp.eq.s32.totalorder %v1388_v2, %v509_v24  ;;  %vm553_vm4 = vcmp.eq.s32.totalorder %v1388_v2, %v481_v33 }
 0x282   :  { %537 = vst.msk [vmem:[%s1930_s4 + $0x60] sm:$0xff] %vm524_vm3, %v481_v33  ;;  %862 = vmatmul.msk.f32.gmra.mxu1 %vm552_vm1, %v992_v56  ;;  %865 = vmatmul.msk.f32.gmra.mxu3 %vm555_vm2, %v992_v56  ;;  %v847_v60 = vsel %vm553_vm4, 1.0, %v993_v57  ;;  %v849_v4 = vsel %vm555_vm2, 1.0, %v993_v57 }
 0x283   :  { %v749_v14 = vadd.f32 %v844_v7, %v748_v42 }
 0x284   :  { %v519_v49 = vpop.xlane.xlu2 %518 }
 0x285   :  { %v750_v32 = vadd.f32 %v845_v8, %v749_v14  ;;  %v520_v37 = vcvt.f32.s32 %v519_v49 }
 0x287   :  { %v751_v39 = vadd.f32 %v846_v44, %v750_v32  ;;  %v523_v46 = vadd.s32 %v522_v36, %v520_v37 }
 0x289   :  { %540 = vst.msk [vmem:[%s1930_s4 + $0x78] sm:$0xff] %vm524_vm3, %v523_v46  ;;  %v752_v47 = vadd.f32 %v847_v60, %v751_v39  ;;  %vm556_vm5 = vcmp.eq.s32.totalorder %v1388_v2, %v523_v46  ;;  %s994_s4 = smov [#allocation4]   ;;  %vm739_vm3 = vcmask 516096  }
 0x28a   :  { %863 = vmatmul.msk.f32.gmra.mxu1 %vm553_vm4, %v992_v56  ;;  %866 = vmatmul.msk.f32.gmra.mxu3 %vm556_vm5, %v992_v56  ;;  %v850_v41 = vsel %vm556_vm5, 1.0, %v993_v57  ;;  %s783_s18 = sshll.u32 %s994_s4, 4  ;;  %s784_s18 = int_to_ptr.vmem [resolvable:$true] %s783_s18 }
 0x28b   :  { %v753_v50 = vadd.f32 %v848_v53, %v752_v47 }
 0x28d   :  { %v754_v59 = vadd.f32 %v849_v4, %v753_v50 }
 0x28f   :  { %v755_v54 = vadd.f32 %v850_v41, %v754_v59 }
 0x291   :  { %v756_v1 = vrot.slane %v755_v54, 4 }
 0x293   :  { %v757_v58 = vadd.f32 %v756_v1, %v755_v54  ;;  %v936_v1 = vld [vmem:[%s1926_s0 + $0x68] sm:$0xff] }
 0x295   :  { %v758_v61 = vrot.slane %v757_v58, 2 }
 0x297   :  { %v759_v62 = vadd.f32 %v758_v61, %v757_v58 }
 0x299   :  { %v760_v45 = vrot.slane %v759_v62, 1 }
 0x29b   :  { %v761_v63 = vadd.f32 %v760_v45, %v759_v62  ;;  %v937_v45 = vld [vmem:[%s1926_s0 + $0x70] sm:$0xff] }
 0x29d   :  { %762 = vst [vmem:[#allocation4] sm:$0x1] %v761_v63 }
 0x29e   :  { %788 = dma.vmem_to_hbm [thread:$0]  %s784_s18, 16, %s786_s21, [#allocation5]  }
 0x2b7   :  { %v612_v2 = vpop.f32.mrf.mxu1 }
 0x2b8   :  { %656 = vst.msk [vmem:[%s1929_s3 + $0x10] sm:$0xff] %vm52_vm0, %v612_v2  ;;  %v672_v9 = vsub.f32 %v612_v2, %v1275_v22  ;;  %v938_v2 = vld [vmem:[%s1926_s0 + $0x60] sm:$0xff] }
 0x2bf   :  { %v615_v56 = vpop.f32.mrf.mxu1 }
 0x2c0   :  { %657 = vst.msk [vmem:[%s1929_s3 + $0x18] sm:$0xff] %vm52_vm0, %v615_v56  ;;  %v673_v51 = vsub.f32 %v615_v56, %v1300_v25 }
 0x2c2   :  { %v689_v18 = vmul.f32 %v673_v51, %v673_v51 }
 0x2c4   :  { %v707_v33 = vsel %vm52_vm0, %v689_v18, 0.0 }
 0x2c7   :  { %v618_v57 = vpop.f32.mrf.mxu1 }
 0x2c8   :  { %658 = vst.msk [vmem:[%s1929_s3 + $0x20] sm:$0xff] %vm52_vm0, %v618_v57  ;;  %v674_v22 = vsub.f32 %v618_v57, %v1325_v28 }
 0x2cf   :  { %v621_v6 = vpop.f32.mrf.mxu1 }
 0x2d0   :  { %659 = vst.msk [vmem:[%s1929_s3 + $0x28] sm:$0xff] %vm52_vm0, %v621_v6  ;;  %v675_v25 = vsub.f32 %v621_v6, %v1229_v17 }
 0x2d2   :  { %v691_v5 = vmul.f32 %v675_v25, %v675_v25 }
 0x2d7   :  { %v624_v12 = vpop.f32.mrf.mxu1 }
 0x2d8   :  { %660 = vst.msk [vmem:[%s1929_s3 + $0x30] sm:$0xff] %vm52_vm0, %v624_v12  ;;  %v676_v21 = vsub.f32 %v624_v12, %v1255_v20  ;;  %v711_v20 = vsel %vm52_vm0, %v691_v5, 0.0 }
 0x2da   :  { %v692_v42 = vmul.f32 %v676_v21, %v676_v21 }
 0x2df   :  { %v627_v3 = vpop.f32.mrf.mxu1 }
 0x2e0   :  { %661 = vst.msk [vmem:[%s1929_s3 + $0x38] sm:$0xff] %vm52_vm0, %v627_v3  ;;  %v677_v28 = vsub.f32 %v627_v3, %v1280_v23  ;;  %v713_v23 = vsel %vm52_vm0, %v692_v42, 0.0 }
 0x2e2   :  { %v693_v8 = vmul.f32 %v677_v28, %v677_v28 }
 0x2e4   :  { %v715_v46 = vsel %vm52_vm0, %v693_v8, 0.0 }
 0x2e7   :  { %v606_v0 = vpop.f32.mrf.mxu0  ;;  %v630_v11 = vpop.f32.mrf.mxu1 }
 0x2e8   :  { %654 = vst.msk [vmem:[%s1929_s3] sm:$0xff] %vm52_vm0, %v606_v0  ;;  %v670_v35 = vsub.f32 %v606_v0, %v1224_v16  ;;  %v688_v16 = vmul.f32 %v672_v9, %v672_v9  ;;  %v678_v7 = vsub.f32 %v630_v11, %v1305_v26 }
 0x2e9   :  { %662 = vst.msk [vmem:[%s1929_s3 + $0x40] sm:$0xff] %vm52_vm0, %v630_v11 }
 0x2ea   :  { %v686_v40 = vmul.f32 %v670_v35, %v670_v35  ;;  %v705_v38 = vsel %vm52_vm0, %v688_v16, 0.0  ;;  %v694_v37 = vmul.f32 %v678_v7, %v678_v7 }
 0x2ec   :  { %v702_v15 = vsel %vm52_vm0, %v686_v40, 0.0  ;;  %v717_v47 = vsel %vm52_vm0, %v694_v37, 0.0 }
 0x2ef   :  { %v609_v10 = vpop.f32.mrf.mxu0  ;;  %v633_v13 = vpop.f32.mrf.mxu1 }
 0x2f0   :  { %655 = vst.msk [vmem:[%s1929_s3 + $0x8] sm:$0xff] %vm52_vm0, %v609_v10  ;;  %v671_v48 = vsub.f32 %v609_v10, %v1250_v19  ;;  %v690_v19 = vmul.f32 %v674_v22, %v674_v22  ;;  %v679_v49 = vsub.f32 %v633_v13, %v1330_v29 }
 0x2f1   :  { %663 = vst.msk [vmem:[%s1929_s3 + $0x48] sm:$0xff] %vm52_vm0, %v633_v13  ;;  %v939_v13 = vld [vmem:[%s1926_s0 + $0x78] sm:$0xff] }
 0x2f2   :  { %v687_v55 = vmul.f32 %v671_v48, %v671_v48  ;;  %v709_v34 = vsel %vm52_vm0, %v690_v19, 0.0  ;;  %v695_v60 = vmul.f32 %v679_v49, %v679_v49 }
 0x2f4   :  { %v703_v27 = vsel %vm52_vm0, %v687_v55, 0.0  ;;  %v719_v4 = vsel %vm52_vm0, %v695_v60, 0.0 }
 0x2f5   :  { %v704_v52 = vadd.f32 %v703_v27, %v702_v15 }
 0x2f7   :  { %v706_v43 = vadd.f32 %v705_v38, %v704_v52  ;;  %v636_v24 = vpop.f32.mrf.mxu1 }
 0x2f8   :  { %664 = vst.msk [vmem:[%s1929_s3 + $0x50] sm:$0xff] %vm52_vm0, %v636_v24  ;;  %v680_v44 = vsub.f32 %v636_v24, %v1343_v30 }
 0x2f9   :  { %v708_v17 = vadd.f32 %v707_v33, %v706_v43 }
 0x2fa   :  { %v696_v53 = vmul.f32 %v680_v44, %v680_v44 }
 0x2fb   :  { %v710_v14 = vadd.f32 %v709_v34, %v708_v17 }
 0x2fc   :  { %v721_v54 = vsel %vm52_vm0, %v696_v53, 0.0 }
 0x2fd   :  { %v712_v36 = vadd.f32 %v711_v20, %v710_v14  ;;  %v645_v32 = vpop.f32.mrf.mxu3 }
 0x2fe   :  { %667 = vst.msk [vmem:[%s1929_s3 + $0x68] sm:$0xff] %vm52_vm0, %v645_v32  ;;  %v683_v58 = vsub.f32 %v645_v32, %v936_v1 }
 0x2ff   :  { %v714_v39 = vadd.f32 %v713_v23, %v712_v36  ;;  %v639_v26 = vpop.f32.mrf.mxu1 }
 0x300   :  { %665 = vst.msk [vmem:[%s1929_s3 + $0x58] sm:$0xff] %vm52_vm0, %v639_v26  ;;  %v681_v30 = vsub.f32 %v639_v26, %v1351_v31  ;;  %v699_v57 = vmul.f32 %v683_v58, %v683_v58 }
 0x301   :  { %v716_v29 = vadd.f32 %v715_v46, %v714_v39 }
 0x302   :  { %v697_v61 = vmul.f32 %v681_v30, %v681_v30  ;;  %v727_v10 = vsel %vm52_vm0, %v699_v57, 0.0 }
 0x303   :  { %v718_v50 = vadd.f32 %v717_v47, %v716_v29 }
 0x304   :  { %v723_v6 = vsel %vm52_vm0, %v697_v61, 0.0 }
 0x305   :  { %v720_v59 = vadd.f32 %v719_v4, %v718_v50  ;;  %v648_v41 = vpop.f32.mrf.mxu3 }
 0x306   :  { %668 = vst.msk [vmem:[%s1929_s3 + $0x70] sm:$0xff] %vm52_vm0, %v648_v41  ;;  %v684_v63 = vsub.f32 %v648_v41, %v937_v45 }
 0x307   :  { %v722_v62 = vadd.f32 %v721_v54, %v720_v59  ;;  %v642_v31 = vpop.f32.mrf.mxu1 }
 0x308   :  { %666 = vst.msk [vmem:[%s1929_s3 + $0x60] sm:$0xff] %vm52_vm0, %v642_v31  ;;  %v682_v56 = vsub.f32 %v642_v31, %v938_v2  ;;  %v700_v0 = vmul.f32 %v684_v63, %v684_v63 }
 0x309   :  { %v724_v3 = vadd.f32 %v723_v6, %v722_v62 }
 0x30a   :  { %v698_v12 = vmul.f32 %v682_v56, %v682_v56  ;;  %v729_v48 = vsel %vm52_vm0, %v700_v0, 0.0 }
 0x30c   :  { %v725_v11 = vsel %vm52_vm0, %v698_v12, 0.0 }
 0x30d   :  { %v726_v35 = vadd.f32 %v725_v11, %v724_v3  ;;  %v651_v9 = vpop.f32.mrf.mxu3 }
 0x30e   :  { %669 = vst.msk [vmem:[%s1929_s3 + $0x78] sm:$0xff] %vm52_vm0, %v651_v9  ;;  %v685_v51 = vsub.f32 %v651_v9, %v939_v13 }
 0x30f   :  { %v728_v40 = vadd.f32 %v727_v10, %v726_v35 }
 0x310   :  { %v701_v16 = vmul.f32 %v685_v51, %v685_v51 }
 0x311   :  { %v730_v22 = vadd.f32 %v729_v48, %v728_v40 }
 0x312   :  { %v731_v55 = vsel %vm52_vm0, %v701_v16, 0.0 }
 0x313   :  { %v732_v18 = vadd.f32 %v731_v55, %v730_v22 }
 0x315   :  { %v733_v25 = vrot.slane %v732_v18, 4 }
 0x317   :  { %v734_v15 = vadd.f32 %v733_v25, %v732_v18 }
 0x319   :  { %v735_v27 = vrot.slane %v734_v15, 2 }
 0x31b   :  { %v736_v52 = vadd.f32 %v735_v27, %v734_v15 }
 0x31d   :  { %v737_v38 = vrot.slane %v736_v52, 1 }
 0x31f   :  { %v738_v19 = vadd.f32 %v737_v38, %v736_v52 }
 0x321   :  { %740 = vst.msk [vmem:[#allocation2] sm:$0x1] %vm739_vm3, %v738_v19 }
 0x322   :  { %777 = dma.vmem_to_hbm [thread:$0]  %s773_s9, 16, %s775_s11, [#allocation3]  }
 0x323   :  { %988 = dma.done.wait [#allocation3], 16  }
 0x324   :  { %989 = vsyncadd [#allocation3], 4294967280 }
 0x325   :  { %990 = dma.done.wait [#allocation5], 16  }
 0x326   :  { %991 = vsyncadd [#allocation5], 4294967280 }
 0x327   :  { %801 = vsyncpa [#allocation3], 1 }
 0x328   :  { %802 = vsyncpa [#allocation5], 1 }

</bundles_post_ra>
